<compile_context>
chip_gen: v5e
topology: v5e:2x2
jax: 0.10.0
libtpu: 0.0.40
codegen_flags: <defaults>
</compile_context>

<pallas_src>
import math

import jax
import jax.numpy as jnp
from jax import lax
from jax.experimental import pallas as pl
from jax.experimental.pallas import tpu as pltpu


_MASK_VALUE = -1e30  # stands in for torch.finfo(float32).min; identical post-softmax


def _round_up(x, m):
    return ((x + m - 1) // m) * m


def _choose_tq(s_pad, target=256):
    """Largest 8-aligned query tile <= target that divides s_pad.

    target=256 suits v6e/v7x's 2x256x256 MXU; pass tq=128 explicitly on v5e.
    """
    t = min(target, s_pad)
    t -= t % 8
    t = max(t, 8)
    while s_pad % t != 0:
        t -= 8
    return t


def _make_kernel(*, tq, s_pad, l_pad, mask_kind, valid_len, return_weights):
    """Build the kernel body for a given (mask_kind, return_weights) variant."""

    def body(q_ref, k_ref, v_ref, rel_ref, mask_ref, o_ref, w_ref):
        i = pl.program_id(1)
        r0 = i * tq

        q = q_ref[0]            # (tq, D)    bf16, pre-scaled by 1/sqrt(d_att)
        k = k_ref[0]            # (s_pad, D) bf16, resident per batch
        v = v_ref[0]            # (s_pad, D) bf16, resident per batch

        # --- q @ k^T on the MXU: bf16 operands, f32 accumulation, no transpose ---
        s = lax.dot_general(q, k, (((1,), (1,)), ((), ())),
                            preferred_element_type=jnp.float32)          # (tq, s_pad)

        # --- relative-position term, skew applied in-kernel ---
        # With the window start a = s_pad - r0 - tq the needed entry is
        #   bias[i, j] = q[i] . table[a + (j + tq - i)]
        # so the per-row lane shift (tq - i) is STATIC; only the window start is
        # dynamic (a cheap sublane slice of the VMEM-resident table).
        a = (pl.num_programs(1) - 1 - i) * tq            # = s_pad - r0 - tq >= 0
        a = pl.multiple_of(a, 8)
        w_rel = rel_ref[0, pl.ds(a, l_pad), :]           # (l_pad, D) bf16
        qr = lax.dot_general(q, w_rel, (((1,), (1,)), ((), ())),
                             preferred_element_type=jnp.float32)         # (tq, l_pad)
        # row i rolled by (l_pad - tq + i)  ==  -(tq - i) mod l_pad  -> XLU slot
        qr = pltpu.roll(qr, shift=l_pad - tq, axis=1, stride=1, stride_axis=0)
        s = s + qr[:, :s_pad]

        # --- mask: torch masked_fill(mask == 1, finfo.min) semantics ---
        if mask_kind == "array":
            s = jnp.where(mask_ref[0] == 1.0, _MASK_VALUE, s)
        elif mask_kind == "causal":
            qi = r0 + lax.broadcasted_iota(jnp.int32, (tq, s_pad), 0)
            kj = lax.broadcasted_iota(jnp.int32, (tq, s_pad), 1)
            s = jnp.where(kj > qi, _MASK_VALUE, s)
        elif valid_len < s_pad:
            # No user mask, but padded key columns must not contribute.
            kj = lax.broadcasted_iota(jnp.int32, (tq, s_pad), 1)
            s = jnp.where(kj >= valid_len, _MASK_VALUE, s)

        # --- numerically stable softmax; normalization deferred to the output ---
        m = jnp.max(s, axis=-1, keepdims=True)
        p = jnp.exp(s - m)                                # (tq, s_pad) f32
        denom = jnp.sum(p, axis=-1, keepdims=True)
        inv = pl.reciprocal(denom, approx=True)           # EUP slot, otherwise idle

        pv = lax.dot_general(p.astype(jnp.bfloat16), v, (((1,), (0,)), ((), ())),
                             preferred_element_type=jnp.float32)         # (tq, D)
        o_ref[0] = (pv * inv).astype(o_ref.dtype)         # TQ*D multiplies, not TQ*S
        if return_weights:
            w_ref[0] = (p * inv).astype(w_ref.dtype)

    if mask_kind == "array":
        if return_weights:
            def kernel(q, k, v, r, mm, o, w):
                body(q, k, v, r, mm, o, w)
        else:
            def kernel(q, k, v, r, mm, o):
                body(q, k, v, r, mm, o, None)
    else:
        if return_weights:
            def kernel(q, k, v, r, o, w):
                body(q, k, v, r, None, o, w)
        else:
            def kernel(q, k, v, r, o):
                body(q, k, v, r, None, o, None)
    return kernel


def _vmem_limit_bytes(*, tq, s_pad, l_pad, n_table, d, has_mask, return_weights, w_bytes):
    bf, f4 = 2, 4
    # 2x double-buffered per-step tiles (q, optional mask, out, optional weights)
    pipelined = 2 * (tq * d * bf
                     + (tq * s_pad * f4 if has_mask else 0)
                     + tq * d * f4
                     + (tq * s_pad * w_bytes if return_weights else 0))
    # K, V and the relative table have constant block indices within a batch but
    # are still double-buffered by the default pipeline.
    resident = 2 * (2 * s_pad * d * bf + n_table * d * bf)
    # In-kernel f32 intermediates (scores, exp, qr + temporaries).
    scratch = (3 * tq * s_pad + 2 * tq * l_pad) * f4
    need = pipelined + resident + scratch + (4 << 20)
    cap = 48 << 20                       # safe on v5e/v6e (128 MiB) and v7x (64 MiB)
    try:
        cap = int(pltpu.get_tpu_info().vmem_capacity_bytes * 3 // 4)
    except Exception:
        pass
    return int(min(max(need, 16 << 20), cap))


def relative_global_attention(q, k, v, relative_embeddings, mask=None,
                              d_att=None, return_weights=False, tq=None,
                              weights_dtype=jnp.float32):
    """RelativeGlobalAttention forward.

    q, k, v: (B, S, D).  relative_embeddings: (2S+1, D) shared table or
    (B, 2S+1, D) (the pass_pre-expanded tensor).  mask: None, "causal", or an
    array (S, S) / (B, S, S) with 1 = masked (torch masked_fill convention).
    Returns out (B, S, D), or (out, attention_weights) if return_weights.
    """
    B, S, D = q.shape
    d_att = D if d_att is None else d_att
    scale = 1.0 / math.sqrt(d_att)

    # --- tiling / padding: everything 8-aligned so blocks satisfy the (8,128) rule ---
    if tq is not None:
        assert tq % 8 == 0, "query tile must be a multiple of 8"
        s_pad = _round_up(S, tq)
    else:
        s_pad = _round_up(S, 8)
        tq = _choose_tq(s_pad)
    nq = s_pad // tq
    l_pad = _round_up(s_pad + tq, 128)     # lane width of the skewed q@rel^T tile
    n_table = (s_pad - tq) + l_pad         # rows of the resident relative table

    # --- operands: bf16, q pre-scaled by 1/sqrt(d_att); pad the sequence axis ---
    pad_s = ((0, 0), (0, s_pad - S), (0, 0))
    qb = jnp.pad((q * scale).astype(jnp.bfloat16), pad_s)
    kb = jnp.pad(k.astype(jnp.bfloat16), pad_s)
    vb = jnp.pad(v.astype(jnp.bfloat16), pad_s)

    # --- relative table: shared (2S+1, D) or per-batch (B, 2S+1, D) ---
    rel = jnp.asarray(relative_embeddings)
    if rel.ndim == 2:
        rel = rel[None]
    G = rel.shape[0]
    assert G in (1, B), "relative_embeddings leading dim must be 1 or B"
    assert rel.shape[1] == 2 * S + 1 and rel.shape[2] == D
    front = s_pad - S
    relb = jnp.pad(rel.astype(jnp.bfloat16), ((0, 0), (front, 0), (0, 0)))
    rows = relb.shape[1]
    if rows < n_table:
        relb = jnp.pad(relb, ((0, 0), (0, n_table - rows), (0, 0)))
    elif rows > n_table:
        relb = relb[:, :n_table]           # only rows the kernel never reads
    rel_map = (lambda b, i: (b, 0, 0)) if G == B else (lambda b, i: (0, 0, 0))

    # --- mask handling ---
    if isinstance(mask, str):
        assert mask == "causal"
        mask_kind, mask_arr = "causal", None
    elif mask is not None:
        mask_kind = "array"
        m = jnp.asarray(mask)
        if m.ndim == 2:
            m = m[None]
        assert m.shape[-2:] == (S, S) and m.shape[0] in (1, B)
        m = m.astype(jnp.float32)
        m = jnp.pad(m, ((0, 0), (0, s_pad - S), (0, 0)))                       # pad query rows: unmasked
        m = jnp.pad(m, ((0, 0), (0, 0), (0, s_pad - S)), constant_values=1.0)  # pad key cols: masked
        mask_arr = m
    else:
        mask_kind, mask_arr = "none", None

    # --- specs ---
    in_specs = [
        pl.BlockSpec((1, tq, D), lambda b, i: (b, i, 0)),       # q tile
        pl.BlockSpec((1, s_pad, D), lambda b, i: (b, 0, 0)),    # k (resident per batch)
        pl.BlockSpec((1, s_pad, D), lambda b, i: (b, 0, 0)),    # v (resident per batch)
        pl.BlockSpec((1, n_table, D), rel_map),                 # relative table (resident)
    ]
    args = [qb, kb, vb, relb]
    if mask_kind == "array":
        gm = mask_arr.shape[0]
        mmap = (lambda b, i: (b, i, 0)) if gm == B else (lambda b, i: (0, i, 0))
        in_specs.append(pl.BlockSpec((1, tq, s_pad), mmap))
        args.append(mask_arr)

    if return_weights:
        out_shape = (jax.ShapeDtypeStruct((B, s_pad, D), jnp.float32),
                     jax.ShapeDtypeStruct((B, s_pad, s_pad), weights_dtype))
        out_specs = (pl.BlockSpec((1, tq, D), lambda b, i: (b, i, 0)),
                     pl.BlockSpec((1, tq, s_pad), lambda b, i: (b, i, 0)))
    else:
        out_shape = jax.ShapeDtypeStruct((B, s_pad, D), jnp.float32)
        out_specs = pl.BlockSpec((1, tq, D), lambda b, i: (b, i, 0))

    kernel = _make_kernel(tq=tq, s_pad=s_pad, l_pad=l_pad, mask_kind=mask_kind,
                          valid_len=S, return_weights=return_weights)

    vmem_limit = _vmem_limit_bytes(
        tq=tq, s_pad=s_pad, l_pad=l_pad, n_table=n_table, d=D,
        has_mask=(mask_kind == "array"), return_weights=return_weights,
        w_bytes=jnp.dtype(weights_dtype).itemsize)

    grid_spec = pltpu.PrefetchScalarGridSpec(
        num_scalar_prefetch=0,
        grid=(B, nq),
        in_specs=in_specs,
        out_specs=out_specs,
    )

    out = pl.pallas_call(
        kernel,
        out_shape=out_shape,
        grid_spec=grid_spec,
        compiler_params=pltpu.CompilerParams(
            dimension_semantics=("parallel", "parallel"),
            vmem_limit_bytes=vmem_limit,
        ),
    )(*args)

    if return_weights:
        o, w = out
        return o[:, :S, :], w[:, :S, :S]
    return out[:, :S, :]


def _reference(q, k, v, rel, mask, d_att):
    """Independent f32 reference (direct gather formulation of the skew)."""
    B, S, D = q.shape
    rel2 = rel if rel.ndim == 2 else rel[0]
    idx = S + jnp.arange(S)[None, :] - jnp.arange(S)[:, None]   # (S, S) in [1, 2S-1]
    rel_g = rel2[idx]                                           # (S, S, D)
    qr = jnp.einsum("bid,ijd->bij", q, rel_g)
    scores = (jnp.einsum("bid,bjd->bij", q, k) + qr) / math.sqrt(d_att)
    if mask is not None:
        m = jnp.broadcast_to(jnp.asarray(mask), (B, S, S))
        scores = jnp.where(m == 1, _MASK_VALUE, scores)
    w = jax.nn.softmax(scores, axis=-1)
    return jnp.einsum("bij,bjd->bid", w, v), w


if __name__ == "__main__":
    B, S, D = 2, 8, 32
    max_dist = 4
    d_att = D

    key = jax.random.PRNGKey(0)
    kq, kk, kv, ke = jax.random.split(key, 4)
    q = jax.random.normal(kq, (B, S, D), dtype=jnp.float32)
    k = jax.random.normal(kk, (B, S, D), dtype=jnp.float32)
    v = jax.random.normal(kv, (B, S, D), dtype=jnp.float32)

    # nn.Embedding(2*max_dist+1, d_att) weight table.
    emb_table = jax.random.normal(ke, (2 * max_dist + 1, D), dtype=jnp.float32)

    # pass_pre: clamp distances to +-max_dist, shift into table range, expand over batch.
    distances = jnp.clip(jnp.arange(-S, S + 1), -max_dist, max_dist) + max_dist
    rel = emb_table[distances]                                   # (2S+1, D)
    rel_expanded = jnp.broadcast_to(rel[None], (B, 2 * S + 1, D))

    # Causal mask with torch convention: 1 = masked (upper triangle).
    mask = (jnp.arange(S)[None, :] > jnp.arange(S)[:, None]).astype(jnp.int32)

    # OUTPUT_ONLY with an explicit (S, S) mask array and the shared 2-D table.
    out = relative_global_attention(q, k, v, rel, mask=mask, d_att=d_att)
    out = jax.block_until_ready(out)

    # OUTPUT_AND_WEIGHTS with the in-kernel causal mask and the pass_pre-expanded table.
    out_w, attn = relative_global_attention(q, k, v, rel_expanded, mask="causal",
                                            d_att=d_att, return_weights=True)
    out_w = jax.block_until_ready(out_w)
    attn = jax.block_until_ready(attn)

    ref_out, ref_attn = _reference(q, k, v, rel, mask, d_att)

    # bf16 MXU operands + approx reciprocal -> compare with loose tolerances.
    assert jnp.allclose(out, ref_out, atol=7e-2, rtol=7e-2), "OUTPUT_ONLY mismatch"
    assert jnp.allclose(out_w, ref_out, atol=7e-2, rtol=7e-2), "OUTPUT mismatch"
    assert jnp.allclose(attn, ref_attn, atol=3e-2, rtol=5e-2), "WEIGHTS mismatch"
    print("KERNEL_OK")
</pallas_src>

<mosaic_0001>
module attributes {stable_mosaic.version = 11 : i64} {
  func.func @kernel(%arg0: i32, %arg1: i32, %arg2: memref<1x8x32xbf16, #tpu.memory_space<vmem>>, %arg3: memref<1x8x32xbf16, #tpu.memory_space<vmem>>, %arg4: memref<1x8x32xbf16, #tpu.memory_space<vmem>>, %arg5: memref<1x128x32xbf16, #tpu.memory_space<vmem>>, %arg6: memref<1x8x8xf32, #tpu.memory_space<vmem>>, %arg7: memref<1x8x32xf32, #tpu.memory_space<vmem>>) attributes {dimension_semantics = [#tpu.dimension_semantics<parallel>, #tpu.dimension_semantics<parallel>], iteration_bounds = array<i64: 2, 1>, scalar_prefetch = 0 : i64, scratch_operands = 0 : i64, tpu.core_type = #tpu.core_type<tc>, window_params = [{transform_indices = @transform_0, window_bounds = array<i64: 1, 8, 32>}, {transform_indices = @transform_1, window_bounds = array<i64: 1, 8, 32>}, {transform_indices = @transform_2, window_bounds = array<i64: 1, 8, 32>}, {pipeline_mode = #tpu.pipeline_mode<synchronous>, transform_indices = @transform_3, window_bounds = array<i64: 1, 128, 32>}, {transform_indices = @transform_4, window_bounds = array<i64: 1, 8, 8>}, {transform_indices = @transform_5, window_bounds = array<i64: 1, 8, 32>}]} {
    %c0 = arith.constant 0 : index
    %c0_0 = arith.constant 0 : index
    %c0_1 = arith.constant 0 : index
    %0 = vector.load %arg2[%c0, %c0_0, %c0_1] : memref<1x8x32xbf16, #tpu.memory_space<vmem>>, vector<1x8x32xbf16>
    %1 = vector.shape_cast %0 : vector<1x8x32xbf16> to vector<8x32xbf16>
    %c0_2 = arith.constant 0 : index
    %c0_3 = arith.constant 0 : index
    %c0_4 = arith.constant 0 : index
    %2 = vector.load %arg3[%c0_2, %c0_3, %c0_4] : memref<1x8x32xbf16, #tpu.memory_space<vmem>>, vector<1x8x32xbf16>
    %3 = vector.shape_cast %2 : vector<1x8x32xbf16> to vector<8x32xbf16>
    %c0_5 = arith.constant 0 : index
    %c0_6 = arith.constant 0 : index
    %c0_7 = arith.constant 0 : index
    %4 = vector.load %arg4[%c0_5, %c0_6, %c0_7] : memref<1x8x32xbf16, #tpu.memory_space<vmem>>, vector<1x8x32xbf16>
    %5 = vector.shape_cast %4 : vector<1x8x32xbf16> to vector<8x32xbf16>
    %cst = arith.constant dense<0.000000e+00> : vector<8x8xf32>
    %6 = tpu.matmul %1, %3, %cst {dimension_numbers = #tpu.dot_dimension_numbers<[1], [1], [0], [0], [0, 0, 1, 0], [], []>} : vector<8x32xbf16>, vector<8x32xbf16>, vector<8x8xf32> -> vector<8x8xf32>
    %c0_i32 = arith.constant 0 : i32
    %7 = arith.subi %c0_i32, %arg1 : i32
    %c8_i32 = arith.constant 8 : i32
    %8 = arith.muli %7, %c8_i32 : i32
    %9 = tpu.assume_multiple %8, 8 : i32
    %c0_8 = arith.constant 0 : index
    %10 = arith.index_cast %9 : i32 to index
    %c0_9 = arith.constant 0 : index
    %11 = vector.load %arg5[%c0_8, %10, %c0_9] : memref<1x128x32xbf16, #tpu.memory_space<vmem>>, vector<1x128x32xbf16>
    %12 = vector.shape_cast %11 : vector<1x128x32xbf16> to vector<128x32xbf16>
    %cst_10 = arith.constant dense<0.000000e+00> : vector<8x128xf32>
    %13 = tpu.matmul %1, %12, %cst_10 {dimension_numbers = #tpu.dot_dimension_numbers<[1], [1], [0], [0], [0, 0, 1, 0], [], []>} : vector<8x32xbf16>, vector<128x32xbf16>, vector<8x128xf32> -> vector<8x128xf32>
    %c120_i32 = arith.constant 120 : i32
    %14 = tpu.dynamic_rotate %13 by %c120_i32 dim 1 {stride = 1 : si32, stride_dimension = 0 : si32} : vector<8x128xf32>, i32 -> vector<8x128xf32>
    %15 = vector.extract_strided_slice %14 {offsets = [0, 0], sizes = [8, 8], strides = [1, 1]} : vector<8x128xf32> to vector<8x8xf32>
    %16 = arith.addf %6, %15 : vector<8x8xf32>
    %c0_11 = arith.constant 0 : index
    %c0_12 = arith.constant 0 : index
    %c0_13 = arith.constant 0 : index
    %17 = vector.load %arg6[%c0_11, %c0_12, %c0_13] : memref<1x8x8xf32, #tpu.memory_space<vmem>>, vector<1x8x8xf32>
    %18 = vector.shape_cast %17 : vector<1x8x8xf32> to vector<8x8xf32>
    %cst_14 = arith.constant 1.000000e+00 : f32
    %19 = vector.broadcast %cst_14 : f32 to vector<8x8xf32>
    %20 = arith.cmpf oeq, %18, %19 : vector<8x8xf32>
    %cst_15 = arith.constant -1.000000e+30 : f32
    %21 = vector.broadcast %cst_15 : f32 to vector<8x8xf32>
    %22 = arith.select %20, %21, %16 : vector<8x8xi1>, vector<8x8xf32>
    %cst_16 = arith.constant dense<0xFF800000> : vector<8xf32>
    %23 = vector.multi_reduction <maximumf>, %22, %cst_16 [1] : vector<8x8xf32> to vector<8xf32>
    %24 = vector.shape_cast %23 : vector<8xf32> to vector<8x1xf32>
    %25 = vector.broadcast %24 : vector<8x1xf32> to vector<8x8xf32>
    %26 = arith.subf %22, %25 : vector<8x8xf32>
    %27 = math.exp %26 : vector<8x8xf32>
    %cst_17 = arith.constant dense<0.000000e+00> : vector<8xf32>
    %28 = vector.multi_reduction <add>, %27, %cst_17 [1] : vector<8x8xf32> to vector<8xf32>
    %29 = vector.shape_cast %28 : vector<8xf32> to vector<8x1xf32>
    %30 = tpu.reciprocal %29 {approx = true} : vector<8x1xf32> -> vector<8x1xf32>
    %31 = arith.truncf %27 : vector<8x8xf32> to vector<8x8xbf16>
    %cst_18 = arith.constant dense<0.000000e+00> : vector<8x32xf32>
    %32 = tpu.matmul %31, %5, %cst_18 {dimension_numbers = #tpu.dot_dimension_numbers<[1], [0], [0], [1], [0, 0, 1, 1], [], []>} : vector<8x8xbf16>, vector<8x32xbf16>, vector<8x32xf32> -> vector<8x32xf32>
    %33 = vector.broadcast %30 : vector<8x1xf32> to vector<8x32xf32>
    %34 = arith.mulf %32, %33 : vector<8x32xf32>
    %c0_19 = arith.constant 0 : index
    %c0_20 = arith.constant 0 : index
    %c0_21 = arith.constant 0 : index
    %35 = vector.load %arg7[%c0_19, %c0_20, %c0_21] : memref<1x8x32xf32, #tpu.memory_space<vmem>>, vector<1x8x32xf32>
    %36 = vector.shape_cast %35 : vector<1x8x32xf32> to vector<8x32xf32>
    %37 = vector.shape_cast %34 : vector<8x32xf32> to vector<1x8x32xf32>
    tpu.vector_store %arg7[%c0_19, %c0_20, %c0_21], %37 {strides = array<i32>} : memref<1x8x32xf32, #tpu.memory_space<vmem>>, vector<1x8x32xf32>,
    return
  }
  func.func @transform_0(%arg0: i32, %arg1: i32) -> (i32, i32, i32) {
    %c0_i32 = arith.constant 0 : i32
    %c0_i32_0 = arith.constant 0 : i32
    return %arg0, %arg1, %c0_i32 : i32, i32, i32
  }
  func.func @transform_1(%arg0: i32, %arg1: i32) -> (i32, i32, i32) {
    %c0_i32 = arith.constant 0 : i32
    %c0_i32_0 = arith.constant 0 : i32
    %c0_i32_1 = arith.constant 0 : i32
    return %arg0, %c0_i32, %c0_i32_0 : i32, i32, i32
  }
  func.func @transform_2(%arg0: i32, %arg1: i32) -> (i32, i32, i32) {
    %c0_i32 = arith.constant 0 : i32
    %c0_i32_0 = arith.constant 0 : i32
    %c0_i32_1 = arith.constant 0 : i32
    return %arg0, %c0_i32, %c0_i32_0 : i32, i32, i32
  }
  func.func @transform_3(%arg0: i32, %arg1: i32) -> (i32, i32, i32) {
    %c0_i32 = arith.constant 0 : i32
    %c0_i32_0 = arith.constant 0 : i32
    %c0_i32_1 = arith.constant 0 : i32
    %c0_i32_2 = arith.constant 0 : i32
    return %c0_i32, %c0_i32_0, %c0_i32_1 : i32, i32, i32
  }
  func.func @transform_4(%arg0: i32, %arg1: i32) -> (i32, i32, i32) {
    %c0_i32 = arith.constant 0 : i32
    %c0_i32_0 = arith.constant 0 : i32
    %c0_i32_1 = arith.constant 0 : i32
    return %c0_i32, %arg1, %c0_i32_0 : i32, i32, i32
  }
  func.func @transform_5(%arg0: i32, %arg1: i32) -> (i32, i32, i32) {
    %c0_i32 = arith.constant 0 : i32
    %c0_i32_0 = arith.constant 0 : i32
    return %arg0, %arg1, %c0_i32 : i32, i32, i32
  }
}

</mosaic_0001>

<bundles_post_ra>
// kernel: tpu_custom_call.1
= control target key start
LH: loop header
LB: loop body
LE: loop exit
PB: predicated region body
PF: predicated region fallthrough
CT: control target
= control target key end

     0   :  { %10 = vsyncpa [#allocation3], 0  ;;  %s967_s0 = inlined_call_operand.vmem [shape: bf16[2,8,32], index: 0, kind: input, shape index: {}]   ;;  %s968_s1 = inlined_call_operand.vmem [shape: bf16[2,8,32], index: 1, kind: input, shape index: {}]   ;;  %s969_s2 = inlined_call_operand.vmem [shape: bf16[2,8,32], index: 2, kind: input, shape index: {}]   ;;  %s970_s3 = inlined_call_operand.vmem [shape: bf16[1,128,32], index: 3, kind: input, shape index: {}]   ;;  %s971_s4 = inlined_call_operand.vmem [shape: f32[1,8,8], index: 4, kind: input, shape index: {}]   ;;  %s972_s5 = inlined_call_operand.hbm [shape: f32[2,8,32], index: 5, kind: output, shape index: {}]  }
   0x1   :  { %12 = vsyncpa [#allocation3 + $0x1], 0  ;;  %s817_s18 = smov 0   ;;  %s819_s19 = smov 0  }
   0x2   :  { %s821_s20 = smov 0   ;;  %s823_s21 = smov 0  }
   0x3   :  { %s825_s22 = smov 0   ;;  %s827_s23 = smov 0  }
   0x4 LB: > { %s589_s24 = sadd.s32 4294967295, %s784_s23   ;;  %s590_s25 = sadd.s32 4294967294, %s784_s23   ;;  %s784_s23 = sphi %s827_s23, %s18_s23   ;;  %s780_s22 = sphi %s825_s22, %s979_s22   ;;  %s776_s21 = sphi %s823_s21, %s978_s21   ;;  %s772_s20 = sphi %s821_s20, %s977_s20   ;;  %s768_s19 = sphi %s819_s19, %s976_s19   ;;  %s764_s18 = sphi %s817_s18, %s975_s18  }
   0x5   : > { %s30_s26 = sadd.s32 1, %s780_s22  ;;  %s166_s27 = sadd.s32 1, %s772_s20 }
   0x6   : > { %p32_p0 = scmp.ge.s32.totalorder %s30_s26, 2  ;;  %p176_p1 = scmp.ne.s32.totalorder %s772_s20, %s768_s19 }
   0x7   : > { %p177_p2 = scmp.eq.s32.totalorder %s589_s24, 1  ;;  %p182_p3 = scmp.ne.s32.totalorder %s768_s19, %s764_s18 }
   0x8   : > { %s981_s26 = smov (%p32_p0, %s30_s26), 0  ;;  %p183_p5 = scmp.eq.s32.totalorder %s590_s25, 1 }
   0x9   : > { %p857_p4 = por %p177_p2, %p176_p1  ;;  %s161_s29 = ssub.s32 %s780_s22, %s981_s26 }
   0xa   : > { %p594_p6 = scmp.ge.s32.totalorder %s784_s23, 1  ;;  %p164_p7 = scmp.eq.s32.totalorder %s161_s29, 0 }
   0xb   : > { %p864_p8 = por %p183_p5, %p182_p3  ;;  %p235_p9 = scmp.lt.s32.totalorder %s784_s23, 3 }
   0xc   : > { %s870_s6 = scalar_select %p164_p7, %s772_s20, %s166_s27  }
   0xd   : > { %p236_p10 = pnand %p594_p6, %p235_p9 }
   0xe   : > { %p277_p11 = scmp.lt.s32.totalorder (!%p236_p10), %s776_s21, 1  ;;  %s786_s16 = smov (!%p236_p10), 376  }
   0xf   : > { %239 = sbr.rel (%p236_p10) target bundleno = 599 (0x257), region = 40  ;;  %s274_s8 = sand.u32 (!%p236_p10), 1, %s768_s19  }
  0x10   : > { %s635_s9 = sshll.u32 (!%p236_p10), %s776_s21, 3 }
  0x11   : > { %s472_s12 = scalar_lea.hbm (!%p236_p10), %s972_s5, %s635_s9 }
  0x14   : > { %v645_v0 = vld [vmem:[%s970_s3 + $0x38] sm:$0xff]  ;;  %vm362_vm0 = vcmask 261120   ;;  %v644_v2 = vld [vmem:[%s970_s3 + $0x30] sm:$0xff]  ;;  %v643_v4 = vld [vmem:[%s970_s3 + $0x28] sm:$0xff]  ;;  %s278_s15 = scalar_select %p277_p11, %s776_s21, 1  ;;  %vm426_vm2 = vcmask 64512  }
  0x15   : > { %v388_v1 = vsel %vm362_vm0, %v645_v0, 0  ;;  %v385_v3 = vsel %vm362_vm0, %v644_v2, 0  ;;  %v382_v5 = vsel %vm362_vm0, %v643_v4, 0  ;;  %v642_v6 = vld [vmem:[%s970_s3 + $0x20] sm:$0xff]  ;;  %v641_v8 = vld [vmem:[%s970_s3 + $0x18] sm:$0xff]  ;;  %v640_v12 = vld [vmem:[%s970_s3 + $0x10] sm:$0xff] }
  0x16   : > { %390 = vmatpush.bf16.xpose.msra.mxu0 %v388_v1  ;;  %v379_v7 = vsel %vm362_vm0, %v642_v6, 0  ;;  %s893_s24 = sshll.u32 %s278_s15, 2  ;;  %v376_v9 = vsel %vm362_vm0, %v641_v8, 0  ;;  %v373_v13 = vsel %vm362_vm0, %v640_v12, 0  ;;  %v639_v15 = vld [vmem:[%s970_s3 + $0x8] sm:$0xff]  ;;  %v638_v17 = vld [vmem:[%s970_s3] sm:$0xff] }
  0x17   : > { %s287_s29 = scalar_lea.vmem %s968_s1, %s893_s24  ;;  %s283_s11 = scalar_lea.vmem %s967_s0, %s893_s24  ;;  %v370_v16 = vsel %vm362_vm0, %v639_v15, 0  ;;  %v367_v18 = vsel %vm362_vm0, %v638_v17, 0  ;;  %v423_v23 = vld [vmem:[%s971_s4] sm:$0xff]  ;;  %vm441_vm3 = vcmask 1043456  }
  0x18   : > { %v298_v10 = vld [vmem:[%s287_s29] sm:$0xf]  ;;  %vm424_vm1 = vcmp.eq.f32.partialorder %v423_v23, 1.0  ;;  %s291_s7 = scalar_lea.vmem %s969_s2, %s893_s24  ;;  %s595_s24 = sshll.u32 %s274_s8, 3 }
  0x19   : > { %v408_v11 = vsel %vm362_vm0, %v298_v10, 0  ;;  %v297_v14 = vld [vmem:[%s283_s11] sm:$0xf]  ;;  %s276_s13 = scalar_lea.vmem [#allocation2], %s595_s24  ;;  %s476_s15 = sshll.u32 %s472_s12, 4  ;;  %s477_s15 = int_to_ptr.hbm [resolvable:$true] %s476_s15 }
  0x1a   : > { %417 = vmatpush.bf16.xpose.msra.mxu1 %v408_v11  ;;  %v299_v28 = vld [vmem:[%s291_s7] sm:$0xf]  ;;  %s474_s14 = sshll.u32 %s276_s13, 4  ;;  %s720_s17 = sshra.s32 %s477_s15, 4  ;;  %s475_s14 = int_to_ptr.vmem [resolvable:$true] %s474_s14  ;;  %s721_s17 = int_to_ptr.hbm [resolvable:$true] %s720_s17 }
  0x1b   : > { %v443_v29 = vsel %vm441_vm3, %v299_v28, 0  ;;  %s722_s21 = scalar_lea.hbm %s721_s17, 8  ;;  %s726_s29 = scalar_lea.hbm %s972_s5, 16 }
  0x1c   : > { %452 = vmatpush.bf16.msra.mxu2 %v443_v29  ;;  %p723_p12 = scmp.ne.s32.totalorder %s721_s17, %s722_s21  ;;  %p727_p1 = scmp.lt.s32.totalorder %s721_s17, %s972_s5 }
  0x1d   : > { %p728_p2 = scmp.lt.s32.totalorder %s726_s29, %s722_s21 }
  0x1e   : > { %391 = vmatpush.bf16.xpose.msra.mxu0 %v385_v3  ;;  %p724_p13 = pnand %p723_p12, %p857_p4 }
  0x1f   : > { %p729_p3 = por %p728_p2, %p727_p1 }
  0x20   : > { %p725_p0 = pneg %p724_p13 }
  0x21   : > { %632 = vmatmul.msk.bf16.vlgmr.msra.gmra.mxu1 %vm362_vm0, %v297_v14 }
  0x22   : > { %p730_p5 = pnand %p729_p3, %p725_p0 }
  0x26   : > { %392 = vmatpush.bf16.xpose.msra.mxu0 %v382_v5 }
  0x2e   : > { %393 = vmatpush.bf16.xpose.msra.mxu0 %v379_v7 }
  0x36   : > { %394 = vmatpush.bf16.xpose.msra.mxu0 %v376_v9 }
  0x3e   : > { %395 = vmatpush.bf16.xpose.msra.mxu0 %v373_v13 }
  0x46   : > { %396 = vmatpush.bf16.xpose.msra.mxu0 %v370_v16 }
  0x4e   : > { %397 = vmatpush.bf16.xpose.msra.mxu0 %v367_v18 }
  0x55   : > { %631 = vmatmul.msk.bf16.vlgmr.msra.gmra.mxu0 %vm362_vm0, %v297_v14 }
  0x9e   : > { %v419_v19 = vpop.f32.mrf.mxu1 }
  0xa6   : > { %v421_v20 = vpop.f32.mrf.mxu1 }
  0xd2   : > { %v399_v21 = vpop.f32.mrf.mxu0 }
  0xd3   : > { %405 = vrot.lane.b32.xlu0 %v399_v21, %s786_s16  ;;  %s461_s16 = scalar_lea.sflag [#allocation3], %s274_s8 }
  0xda   : > { %v401_v22 = vpop.f32.mrf.mxu0 }
 0x145   : > { %v406_v24 = vpop.permute.xlu0 %405 }
 0x146   : > { %v420_v25 = vadd.f32 %v419_v19, %v406_v24 }
 0x148   : > { %v425_v26 = vsel %vm424_vm1, -1e+30, %v420_v25 }
 0x149   : > { %v427_v27 = vsel %vm426_vm2, %v425_v26, -inf }
 0x14a   : > { %428 = vmax.xlane.f32.xlu0 %v427_v27 }
 0x1bd   : > { %v429_v30 = vpop.xlane.xlu0 %428 }
 0x1be   : > { %v430_v31 = vsub.f32 %v425_v26, %v429_v30 }
 0x1c0   : > { %v431_v32 = vmul.f32 1.442695, %v430_v31 }
 0x1c2   : > { %702 = vpow2.f32 %v431_v32 }
 0x1c8   : > { %v703_v33 = vpop.eup %702 }
 0x1c9   : > { %v433_v34 = vsel %vm426_vm2, %v703_v33, 0.0  ;;  %v437_v35 = vpack.c.bf16 %v703_v33, %v703_v33 }
 0x1ca   : > { %434 = vadd.xlane.f32.xlu1 %v433_v34 }
 0x1cb   : > { %633 = vmatmul.msk.bf16.vlgmr.msra.gmra.mxu2 %vm426_vm2, %v437_v35 }
 0x23d   : > { %v435_v36 = vpop.xlane.xlu1 %434 }
 0x23e   : > { %704 = vrcp.f32 %v435_v36 }
 0x244   : > { %v705_v37 = vpop.eup %704 }
 0x24e   : > { %v454_v38 = vpop.f32.mrf.mxu2 }
 0x24f   : > { %v458_v39 = vmul.f32 %v705_v37, %v454_v38 }
 0x251   : > { %459 = vst.msk [vmem:[%s276_s13] sm:$0xff] %vm362_vm0, %v458_v39 }
 0x252   : > { %733 = shalt.err (!%p730_p5)
}
 0x253   : > { %646 = dma.vmem_to_hbm [thread:$0]  (%p857_p4), %s475_s14, 128, %s477_s15, %s461_s16  }
 0x256   : > { %v456_v40 = vpop.f32.mrf.mxu2 }
 0x257 PF: > { %p652_p6 = scmp.ge.s32.totalorder %s784_s23, 2  ;;  %s488_s8 = sand.u32 1, %s764_s18  }
 0x258   : > { %s489_s24 = scalar_lea.sflag [#allocation3], %s488_s8 }
 0x259   : > { %p649_p7 = pnand %p652_p6, %p864_p8 }
 0x25b   : > { %p650_p9 = pneg %p649_p7 }
 0x25d   : > { %759 = dma.done.wait (%p650_p9), %s489_s24, 128  }
 0x25e   : > { %761 = vsyncadd (%p650_p9), %s489_s24, 4294967168  ;;  %s18_s23 = sadd.s32 1, %s784_s23   ;;  %s975_s18 = smov %s768_s19 }
 0x25f   : > { %p15_p10 = scmp.ge.s32.totalorder %s18_s23, 4   ;;  %s976_s19 = smov %s772_s20 }
 0x260   : > { %s977_s20 = smov %s870_s6  ;;  %s978_s21 = smov %s780_s22 }
 0x261   : > { %s979_s22 = smov %s981_s26  ;;  %17 = sbr.rel (!%p15_p10) target bundleno = 4 (0x4), region = 85 }
 0x266   :  { %495 = vsyncpa [#allocation3], 1 }
 0x267   :  { %497 = vsyncpa [#allocation3 + $0x1], 1 }

</bundles_post_ra>
